<compile_context>
chip_gen: v5e
topology: v5e:2x2
jax: 0.10.0
libtpu: 0.0.40
codegen_flags: <defaults>
</compile_context>

<pallas_src>
import functools

import jax
import jax.numpy as jnp
from jax.experimental import pallas as pl
from jax.experimental.pallas import tpu as pltpu

LANE = 128      # TPU lane width
SUBLANE = 8     # TPU sublane width (f32)


def _round_up(x, m):
    return (x + m - 1) // m * m


# ---------------------------------------------------------------------------
# Kernel
# ---------------------------------------------------------------------------
def mlp_kernel(x_ref, w_ref, b_ref, o_ref, *, d_in, n_actions):
    """One batch tile of the 4-layer MLP.

    x_ref : (TB, d_in)            f32  state tile
    w_ref : (d_in + 3*128, 128)   bf16 packed weights [W1; W2; W3; W4],
                                  each lane/row zero-padded to 128
    b_ref : (8, 128)              f32  rows 0..3 hold b1..b4 (zero padded)
    o_ref : (TB, n_actions)       f32  narrow output
    """
    f32 = jnp.float32
    bf16 = jnp.bfloat16

    b = b_ref[...]                 # single load of the packed bias tile
    x = x_ref[...].astype(bf16)

    # static row offsets of each layer's weight block inside the packed buffer
    o1 = d_in
    o2 = o1 + LANE
    o3 = o2 + LANE

    # layer 1 + ReLU : bf16 MXU operands, f32 accumulate, f32 elementwise
    h = jnp.dot(x, w_ref[0:o1, :], preferred_element_type=f32)
    h = jnp.maximum(h + b[0:1, :], 0.0)
    # layer 2 + ReLU (padded lanes stay exactly zero: 0-weights + 0-bias + ReLU)
    h = jnp.dot(h.astype(bf16), w_ref[o1:o2, :], preferred_element_type=f32)
    h = jnp.maximum(h + b[1:2, :], 0.0)
    # layer 3 + ReLU
    h = jnp.dot(h.astype(bf16), w_ref[o2:o3, :], preferred_element_type=f32)
    h = jnp.maximum(h + b[2:3, :], 0.0)
    # layer 4 (no activation); store only the real n_actions lanes
    out = jnp.dot(h.astype(bf16), w_ref[o3:o3 + LANE, :],
                  preferred_element_type=f32)
    o_ref[...] = out[:, :n_actions] + b[3:4, :n_actions]


# ---------------------------------------------------------------------------
# Host-side parameter packing
# ---------------------------------------------------------------------------
def prepare_params(params):
    """Pack (W1,b1,...,W4,b4) into kernel format:

    * one bf16 buffer (d_in + 3*128, 128): W1..W4 row-stacked, every layer's
      output dim lane-padded to 128 with zero columns; W2..W4 input dims
      zero-row-padded to 128 (numerically exact: 0-weights + 0-bias + ReLU(0)=0).
    * one (8, 128) f32 bias tile, rows 0..3 = b1..b4 zero padded.
    """
    w1, b1, w2, b2, w3, b3, w4, b4 = params
    d_in = w1.shape[0]
    assert all(w.shape[1] <= LANE for w in (w1, w2, w3, w4)), \
        "this packing assumes every layer width <= 128"

    def padw(w, rows):
        r, c = w.shape
        return jnp.pad(w, ((0, rows - r), (0, LANE - c)))

    w_pack = jnp.concatenate(
        [padw(w1, d_in), padw(w2, LANE), padw(w3, LANE), padw(w4, LANE)],
        axis=0).astype(jnp.bfloat16)

    bias_pack = jnp.zeros((SUBLANE, LANE), jnp.float32)
    for i, bi in enumerate((b1, b2, b3, b4)):
        bias_pack = bias_pack.at[i, : bi.shape[1]].set(bi[0])

    return w_pack, bias_pack


# ---------------------------------------------------------------------------
# Host-side wrapper
# ---------------------------------------------------------------------------
def mlp_forward(state, kparams, n_actions):
    w_pack, bias_pack = kparams
    B, d_in = state.shape

    # Batch tiling: no host-side padding. tb == B (full-dim block, any size)
    # for small B; otherwise 8-aligned tiles up to 512 with >=2 grid steps so
    # the parallel axis can shard across both v7x TensorCores. Partial last
    # tiles are masked by Pallas; garbage rows are never written back.
    TB_MAX = 512
    if B <= 256:
        tb = B
    elif B <= 2 * TB_MAX:
        tb = _round_up(pl.cdiv(B, 2), SUBLANE)
    else:
        tb = TB_MAX
    grid = (pl.cdiv(B, tb),)

    kernel = functools.partial(mlp_kernel, d_in=d_in, n_actions=n_actions)

    def resident(a):  # packed weights / bias tile stay in VMEM across tiles
        return pl.BlockSpec(a.shape, lambda i: (0, 0))

    out = pl.pallas_call(
        kernel,
        out_shape=jax.ShapeDtypeStruct((B, n_actions), jnp.float32),
        grid=grid,
        in_specs=[
            pl.BlockSpec((tb, d_in), lambda i: (i, 0)),   # state: batch-tiled
            resident(w_pack),
            resident(bias_pack),
        ],
        out_specs=pl.BlockSpec((tb, n_actions), lambda i: (i, 0)),
        compiler_params=pltpu.CompilerParams(
            dimension_semantics=("parallel",)),
    )(state, w_pack, bias_pack)

    return out


# ---------------------------------------------------------------------------
# Init + references
# ---------------------------------------------------------------------------
def init_params(key, input_dims, fc1_dims, fc2_dims, fc3_dims, n_actions):
    """Deterministic init mimicking nn.Linear default (uniform +-1/sqrt(fan_in))."""
    dims = [(input_dims, fc1_dims), (fc1_dims, fc2_dims),
            (fc2_dims, fc3_dims), (fc3_dims, n_actions)]
    params = []
    for (din, dout) in dims:
        key, kw, kb = jax.random.split(key, 3)
        bound = 1.0 / jnp.sqrt(din)
        w = jax.random.uniform(kw, (din, dout), jnp.float32, -bound, bound)
        b = jax.random.uniform(kb, (1, dout), jnp.float32, -bound, bound)
        params += [w, b]
    return tuple(params)


def reference_forward_f32(state, params):
    w1, b1, w2, b2, w3, b3, w4, b4 = params
    h = jnp.maximum(state @ w1 + b1, 0.0)
    h = jnp.maximum(h @ w2 + b2, 0.0)
    h = jnp.maximum(h @ w3 + b3, 0.0)
    return h @ w4 + b4


def reference_forward_bf16(state, params):
    """Same bf16-operand / f32-accumulate recipe as the kernel."""
    w1, b1, w2, b2, w3, b3, w4, b4 = params
    bf16, f32 = jnp.bfloat16, jnp.float32

    def lin(x, w, b):
        return jnp.dot(x.astype(bf16), w.astype(bf16),
                       preferred_element_type=f32) + b

    h = jnp.maximum(lin(state, w1, b1), 0.0)
    h = jnp.maximum(lin(h, w2, b2), 0.0)
    h = jnp.maximum(lin(h, w3, b3), 0.0)
    return lin(h, w4, b4)


# TODO(synk): Adam optimizer / MSELoss / training step are not part of the
# forward pass and are not implemented here.

# ---------------------------------------------------------------------------
if __name__ == "__main__":
    input_dims, fc1_dims, fc2_dims, fc3_dims, n_actions = 32, 64, 64, 32, 8

    key = jax.random.PRNGKey(0)
    key, kx, kx2 = jax.random.split(key, 3)
    params = init_params(key, input_dims, fc1_dims, fc2_dims, fc3_dims, n_actions)
    kparams = prepare_params(params)

    # --- small call (module-style shapes, batch=2, single full-extent block) ---
    state = jax.random.normal(kx, (2, input_dims), jnp.float32)
    actions = jax.block_until_ready(mlp_forward(state, kparams, n_actions))
    assert actions.shape == (2, n_actions)
    ref_bf16 = reference_forward_bf16(state, params)
    ref_f32 = reference_forward_f32(state, params)
    assert jnp.allclose(actions, ref_bf16, atol=1e-4, rtol=1e-4)
    assert jnp.allclose(actions, ref_f32, atol=3e-2, rtol=3e-2)

    # --- batched call (grid=2 with a partial last tile: 600 = 304 + 296) ---
    state_big = jax.random.normal(kx2, (600, input_dims), jnp.float32)
    actions_big = jax.block_until_ready(mlp_forward(state_big, kparams, n_actions))
    assert actions_big.shape == (600, n_actions)
    assert jnp.allclose(actions_big, reference_forward_bf16(state_big, params),
                        atol=1e-4, rtol=1e-4)

    print("KERNEL_OK")
</pallas_src>

<mosaic_0001>
module attributes {stable_mosaic.version = 11 : i64} {
  func.func @mlp_kernel(%arg0: i32, %arg1: memref<2x32xf32, #tpu.memory_space<vmem>>, %arg2: memref<416x128xbf16, #tpu.memory_space<vmem>>, %arg3: memref<8x128xf32, #tpu.memory_space<vmem>>, %arg4: memref<2x8xf32, #tpu.memory_space<vmem>>) attributes {dimension_semantics = [#tpu.dimension_semantics<parallel>], iteration_bounds = array<i64: 1>, scalar_prefetch = 0 : i64, scratch_operands = 0 : i64, tpu.core_type = #tpu.core_type<tc>, window_params = [{transform_indices = @transform_0, window_bounds = array<i64: 2, 32>}, {pipeline_mode = #tpu.pipeline_mode<synchronous>, transform_indices = @transform_1, window_bounds = array<i64: 416, 128>}, {pipeline_mode = #tpu.pipeline_mode<synchronous>, transform_indices = @transform_2, window_bounds = array<i64: 8, 128>}, {transform_indices = @transform_3, window_bounds = array<i64: 2, 8>}]} {
    %c0 = arith.constant 0 : index
    %c0_0 = arith.constant 0 : index
    %0 = vector.load %arg3[%c0, %c0_0] : memref<8x128xf32, #tpu.memory_space<vmem>>, vector<8x128xf32>
    %c0_1 = arith.constant 0 : index
    %c0_2 = arith.constant 0 : index
    %1 = vector.load %arg1[%c0_1, %c0_2] : memref<2x32xf32, #tpu.memory_space<vmem>>, vector<2x32xf32>
    %2 = arith.truncf %1 : vector<2x32xf32> to vector<2x32xbf16>
    %c0_3 = arith.constant 0 : index
    %c0_4 = arith.constant 0 : index
    %3 = vector.load %arg2[%c0_3, %c0_4] : memref<416x128xbf16, #tpu.memory_space<vmem>>, vector<32x128xbf16>
    %cst = arith.constant dense<0.000000e+00> : vector<2x128xf32>
    %4 = tpu.matmul %2, %3, %cst {dimension_numbers = #tpu.dot_dimension_numbers<[1], [0], [0], [1], [0, 0, 1, 1], [], []>} : vector<2x32xbf16>, vector<32x128xbf16>, vector<2x128xf32> -> vector<2x128xf32>
    %5 = vector.extract_strided_slice %0 {offsets = [0, 0], sizes = [1, 128], strides = [1, 1]} : vector<8x128xf32> to vector<1x128xf32>
    %6 = vector.broadcast %5 : vector<1x128xf32> to vector<2x128xf32>
    %7 = arith.addf %4, %6 : vector<2x128xf32>
    %cst_5 = arith.constant 0.000000e+00 : f32
    %8 = vector.broadcast %cst_5 : f32 to vector<2x128xf32>
    %9 = arith.maximumf %7, %8 : vector<2x128xf32>
    %10 = arith.truncf %9 : vector<2x128xf32> to vector<2x128xbf16>
    %c32 = arith.constant 32 : index
    %c0_6 = arith.constant 0 : index
    %11 = vector.load %arg2[%c32, %c0_6] : memref<416x128xbf16, #tpu.memory_space<vmem>>, vector<128x128xbf16>
    %cst_7 = arith.constant dense<0.000000e+00> : vector<2x128xf32>
    %12 = tpu.matmul %10, %11, %cst_7 {dimension_numbers = #tpu.dot_dimension_numbers<[1], [0], [0], [1], [0, 0, 1, 1], [], []>} : vector<2x128xbf16>, vector<128x128xbf16>, vector<2x128xf32> -> vector<2x128xf32>
    %13 = vector.extract_strided_slice %0 {offsets = [1, 0], sizes = [1, 128], strides = [1, 1]} : vector<8x128xf32> to vector<1x128xf32>
    %14 = vector.broadcast %13 : vector<1x128xf32> to vector<2x128xf32>
    %15 = arith.addf %12, %14 : vector<2x128xf32>
    %cst_8 = arith.constant 0.000000e+00 : f32
    %16 = vector.broadcast %cst_8 : f32 to vector<2x128xf32>
    %17 = arith.maximumf %15, %16 : vector<2x128xf32>
    %18 = arith.truncf %17 : vector<2x128xf32> to vector<2x128xbf16>
    %c160 = arith.constant 160 : index
    %c0_9 = arith.constant 0 : index
    %19 = vector.load %arg2[%c160, %c0_9] : memref<416x128xbf16, #tpu.memory_space<vmem>>, vector<128x128xbf16>
    %cst_10 = arith.constant dense<0.000000e+00> : vector<2x128xf32>
    %20 = tpu.matmul %18, %19, %cst_10 {dimension_numbers = #tpu.dot_dimension_numbers<[1], [0], [0], [1], [0, 0, 1, 1], [], []>} : vector<2x128xbf16>, vector<128x128xbf16>, vector<2x128xf32> -> vector<2x128xf32>
    %21 = vector.extract_strided_slice %0 {offsets = [2, 0], sizes = [1, 128], strides = [1, 1]} : vector<8x128xf32> to vector<1x128xf32>
    %22 = vector.broadcast %21 : vector<1x128xf32> to vector<2x128xf32>
    %23 = arith.addf %20, %22 : vector<2x128xf32>
    %cst_11 = arith.constant 0.000000e+00 : f32
    %24 = vector.broadcast %cst_11 : f32 to vector<2x128xf32>
    %25 = arith.maximumf %23, %24 : vector<2x128xf32>
    %26 = arith.truncf %25 : vector<2x128xf32> to vector<2x128xbf16>
    %c288 = arith.constant 288 : index
    %c0_12 = arith.constant 0 : index
    %27 = vector.load %arg2[%c288, %c0_12] : memref<416x128xbf16, #tpu.memory_space<vmem>>, vector<128x128xbf16>
    %cst_13 = arith.constant dense<0.000000e+00> : vector<2x128xf32>
    %28 = tpu.matmul %26, %27, %cst_13 {dimension_numbers = #tpu.dot_dimension_numbers<[1], [0], [0], [1], [0, 0, 1, 1], [], []>} : vector<2x128xbf16>, vector<128x128xbf16>, vector<2x128xf32> -> vector<2x128xf32>
    %29 = vector.extract_strided_slice %28 {offsets = [0, 0], sizes = [2, 8], strides = [1, 1]} : vector<2x128xf32> to vector<2x8xf32>
    %30 = vector.extract_strided_slice %0 {offsets = [3, 0], sizes = [1, 8], strides = [1, 1]} : vector<8x128xf32> to vector<1x8xf32>
    %31 = vector.broadcast %30 : vector<1x8xf32> to vector<2x8xf32>
    %32 = arith.addf %29, %31 : vector<2x8xf32>
    %c0_14 = arith.constant 0 : index
    %c0_15 = arith.constant 0 : index
    %33 = vector.load %arg4[%c0_14, %c0_15] : memref<2x8xf32, #tpu.memory_space<vmem>>, vector<2x8xf32>
    tpu.vector_store %arg4[%c0_14, %c0_15], %32 {strides = array<i32>} : memref<2x8xf32, #tpu.memory_space<vmem>>, vector<2x8xf32>,
    return
  }
  func.func @transform_0(%arg0: i32) -> (i32, i32) {
    %c0_i32 = arith.constant 0 : i32
    %c0_i32_0 = arith.constant 0 : i32
    return %arg0, %c0_i32 : i32, i32
  }
  func.func @transform_1(%arg0: i32) -> (i32, i32) {
    %c0_i32 = arith.constant 0 : i32
    %c0_i32_0 = arith.constant 0 : i32
    %c0_i32_1 = arith.constant 0 : i32
    return %c0_i32, %c0_i32_0 : i32, i32
  }
  func.func @transform_2(%arg0: i32) -> (i32, i32) {
    %c0_i32 = arith.constant 0 : i32
    %c0_i32_0 = arith.constant 0 : i32
    %c0_i32_1 = arith.constant 0 : i32
    return %c0_i32, %c0_i32_0 : i32, i32
  }
  func.func @transform_3(%arg0: i32) -> (i32, i32) {
    %c0_i32 = arith.constant 0 : i32
    %c0_i32_0 = arith.constant 0 : i32
    return %arg0, %c0_i32 : i32, i32
  }
}

</mosaic_0001>

<bundles_post_ra>
// kernel: tpu_custom_call.1
= control target key start
LH: loop header
LB: loop body
LE: loop exit
PB: predicated region body
PF: predicated region fallthrough
CT: control target
= control target key end

     0   :  { %8 = vsyncpa [#allocation3], 0  ;;  %s634_s0 = inlined_call_operand.hbm [shape: f32[2,32], index: 0, kind: input, shape index: {}]   ;;  %s635_s1 = inlined_call_operand.hbm [shape: bf16[416,128], index: 1, kind: input, shape index: {}]   ;;  %s636_s2 = inlined_call_operand.hbm [shape: f32[8,128], index: 2, kind: input, shape index: {}]   ;;  %s637_s3 = inlined_call_operand.hbm [shape: f32[2,8], index: 3, kind: output, shape index: {}]  }
   0x1   :  { %9 = vsyncpa [#allocation6], 0  ;;  %s26_s14 = sshll.u32 %s635_s1, 4  ;;  %s27_s14 = int_to_ptr.hbm [resolvable:$true] %s26_s14 }
   0x2   :  { %10 = vsyncpa [#allocation4], 0  ;;  %s596_s15 = smov [#allocation5]   ;;  %s16_s19 = sshll.u32 %s634_s0, 4  ;;  %s17_s19 = int_to_ptr.hbm [resolvable:$true] %s16_s19 }
   0x3   :  { %s28_s16 = sshll.u32 %s596_s15, 4  ;;  %s597_s20 = smov 64   ;;  %s29_s16 = int_to_ptr.vmem [resolvable:$true] %s28_s16 }
   0x4   :  { %s598_s21 = smov 4   ;;  %s599_s22 = smov [#allocation2]  }
   0x5   :  { %34 = dma.hbm_to_vmem [thread:$0]  %s27_s14, 3328, %s29_s16, [#allocation6], %s597_s20, %s597_s20, %s598_s21  }
   0x6   :  { %s18_s23 = sshll.u32 %s599_s22, 4  ;;  %s40_s26 = sshll.u32 %s636_s2, 4  ;;  %s19_s23 = int_to_ptr.vmem [resolvable:$true] %s18_s23  ;;  %s41_s26 = int_to_ptr.hbm [resolvable:$true] %s40_s26 }
   0x7   :  { %21 = dma.hbm_to_vmem [thread:$0]  %s17_s19, 32, %s19_s23, [#allocation3]  }
   0x8   :  { %s600_s1 = smov [#allocation7]  }
   0x9   :  { %s42_s27 = sshll.u32 %s600_s1, 4  ;;  %s43_s27 = int_to_ptr.vmem [resolvable:$true] %s42_s27 }
   0xa   :  { %45 = dma.hbm_to_vmem [thread:$0]  %s41_s26, 128, %s43_s27, [#allocation6]  }
   0xb   :  { %590 = dma.done.wait [#allocation3], 32  }
   0xc   :  { %591 = vsyncadd [#allocation3], 4294967264 }
   0xd   :  { %592 = dma.done.wait [#allocation6], 3456  }
   0xe   :  { %593 = vsyncadd [#allocation6], 4294963840  ;;  %v463_v0 = vld [vmem:[#allocation5 + $0x8] sm:$0xff]  ;;  %v462_v2 = vld [vmem:[#allocation5] sm:$0xff]  ;;  %vm79_vm0 = vcmask 261120   ;;  %s601_s0 = smov [#allocation8]  }
   0xf   :  { %v471_v1 = vld [vmem:[#allocation5 + $0x48] sm:$0xff]  ;;  %89 = vmatpush.bf16.msra.mxu0 %v463_v0  ;;  %v60_v3 = vld [vmem:[#allocation2] sm:$0x3]  ;;  %v470_v4 = vld [vmem:[#allocation5 + $0x40] sm:$0xff]  ;;  %s344_s2 = sshll.u32 %s601_s0, 4  ;;  %s346_s30 = sshll.u32 %s637_s3, 4  ;;  %s345_s2 = int_to_ptr.vmem [resolvable:$true] %s344_s2  ;;  %s347_s30 = int_to_ptr.hbm [resolvable:$true] %s346_s30 }
  0x10   :  { %163 = vmatpush.bf16.msra.mxu1 %v471_v1  ;;  %v61_v5 = vpack.c.bf16 %v60_v3, %v60_v3  ;;  %v469_v6 = vld [vmem:[#allocation5 + $0x38] sm:$0xff]  ;;  %v468_v7 = vld [vmem:[#allocation5 + $0x30] sm:$0xff]  ;;  %v467_v8 = vld [vmem:[#allocation5 + $0x28] sm:$0xff]  ;;  %vm337_vm1 = vcmask 58368  }
  0x11   :  { %v466_v9 = vld [vmem:[#allocation5 + $0x20] sm:$0xff]  ;;  %v465_v10 = vld [vmem:[#allocation5 + $0x18] sm:$0xff]  ;;  %v464_v11 = vld [vmem:[#allocation5 + $0x10] sm:$0xff] }
  0x12   :  { %v479_v12 = vld [vmem:[#allocation5 + $0x88] sm:$0xff]  ;;  %v478_v13 = vld [vmem:[#allocation5 + $0x80] sm:$0xff]  ;;  %v477_v14 = vld [vmem:[#allocation5 + $0x78] sm:$0xff] }
  0x13   :  { %90 = vmatpush.bf16.msra.mxu0 %v462_v2  ;;  %243 = vmatpush.bf16.msra.mxu2 %v479_v12  ;;  %v476_v15 = vld [vmem:[#allocation5 + $0x70] sm:$0xff]  ;;  %v475_v16 = vld [vmem:[#allocation5 + $0x68] sm:$0xff]  ;;  %v474_v18 = vld [vmem:[#allocation5 + $0x60] sm:$0xff] }
  0x14   :  { %164 = vmatpush.bf16.msra.mxu1 %v470_v4  ;;  %v59_v17 = vld [vmem:[#allocation7] sm:$0xff]  ;;  %v473_v25 = vld [vmem:[#allocation5 + $0x58] sm:$0xff]  ;;  %v487_v27 = vld [vmem:[#allocation5 + $0xc8] sm:$0xff] }
  0x15   :  { %v66_v19 = vperm.slane %v59_v17, 0  ;;  %v472_v26 = vld [vmem:[#allocation5 + $0x50] sm:$0xff]  ;;  %322 = vmatpush.bf16.msra.mxu3 %v487_v27  ;;  %v486_v28 = vld [vmem:[#allocation5 + $0xc0] sm:$0xff]  ;;  %v485_v29 = vld [vmem:[#allocation5 + $0xb8] sm:$0xff]  ;;  %v114_v33 = vperm.slane %v59_v17, 1  ;;  %v194_v41 = vperm.slane %v59_v17, 2 }
  0x16   :  { %365 = vmatmul.msk.bf16.vlgmr.msra.gmra.mxu0 %vm79_vm0, %v61_v5  ;;  %v484_v30 = vld [vmem:[#allocation5 + $0xb0] sm:$0xff]  ;;  %v483_v31 = vld [vmem:[#allocation5 + $0xa8] sm:$0xff]  ;;  %v482_v32 = vld [vmem:[#allocation5 + $0xa0] sm:$0xff]  ;;  %v335_v47 = vperm.slane %v59_v17, 3 }
  0x17   :  { %244 = vmatpush.bf16.msra.mxu2 %v478_v13  ;;  %v481_v39 = vld [vmem:[#allocation5 + $0x98] sm:$0xff]  ;;  %v480_v40 = vld [vmem:[#allocation5 + $0x90] sm:$0xff] }
  0x18   :  { %165 = vmatpush.bf16.msra.mxu1 %v469_v6 }
  0x19   :  { %323 = vmatpush.bf16.msra.mxu3 %v486_v28 }
  0x1b   :  { %245 = vmatpush.bf16.msra.mxu2 %v477_v14 }
  0x1c   :  { %166 = vmatpush.bf16.msra.mxu1 %v468_v7 }
  0x1d   :  { %324 = vmatpush.bf16.msra.mxu3 %v485_v29 }
  0x1f   :  { %246 = vmatpush.bf16.msra.mxu2 %v476_v15 }
  0x20   :  { %167 = vmatpush.bf16.msra.mxu1 %v467_v8 }
  0x21   :  { %325 = vmatpush.bf16.msra.mxu3 %v484_v30 }
  0x23   :  { %247 = vmatpush.bf16.msra.mxu2 %v475_v16 }
  0x24   :  { %168 = vmatpush.bf16.msra.mxu1 %v466_v9 }
  0x25   :  { %326 = vmatpush.bf16.msra.mxu3 %v483_v31 }
  0x27   :  { %248 = vmatpush.bf16.msra.mxu2 %v474_v18 }
  0x28   :  { %169 = vmatpush.bf16.msra.mxu1 %v465_v10 }
  0x29   :  { %327 = vmatpush.bf16.msra.mxu3 %v482_v32 }
  0x2b   :  { %249 = vmatpush.bf16.msra.mxu2 %v473_v25 }
  0x2c   :  { %170 = vmatpush.bf16.msra.mxu1 %v464_v11 }
  0x2d   :  { %328 = vmatpush.bf16.msra.mxu3 %v481_v39 }
  0x2f   :  { %250 = vmatpush.bf16.msra.mxu2 %v472_v26 }
  0x31   :  { %329 = vmatpush.bf16.msra.mxu3 %v480_v40 }
  0x93   :  { %v92_v20 = vpop.f32.mrf.mxu0 }
  0x94   :  { %v93_v21 = vadd.f32 %v92_v20, %v66_v19 }
  0x96   :  { %v96_v22 = vmax.f32 %v93_v21, 0.0 }
  0x98   :  { %v97_v23 = vpack.c.bf16 %v96_v22, %v96_v22 }
  0x9a   :  { %171 = vmatmul.bf16.vlgmr.msra.gmra.mxu1 %v97_v23 }
  0x9b   :  { %v94_v24 = vpop.f32.mrf.mxu0 }
 0x117   :  { %v172_v34 = vpop.f32.mrf.mxu1 }
 0x118   :  { %v173_v35 = vadd.f32 %v172_v34, %v114_v33 }
 0x11a   :  { %v176_v36 = vmax.f32 %v173_v35, 0.0 }
 0x11c   :  { %v177_v37 = vpack.c.bf16 %v176_v36, %v176_v36 }
 0x11e   :  { %251 = vmatmul.bf16.vlgmr.msra.gmra.mxu2 %v177_v37 }
 0x11f   :  { %v174_v38 = vpop.f32.mrf.mxu1 }
 0x1a1   :  { %v252_v42 = vpop.f32.mrf.mxu2 }
 0x1a2   :  { %v253_v43 = vadd.f32 %v252_v42, %v194_v41 }
 0x1a4   :  { %v256_v44 = vmax.f32 %v253_v43, 0.0 }
 0x1a6   :  { %v257_v45 = vpack.c.bf16 %v256_v44, %v256_v44 }
 0x1a8   :  { %330 = vmatmul.bf16.vlgmr.msra.gmra.mxu3 %v257_v45 }
 0x1a9   :  { %v254_v46 = vpop.f32.mrf.mxu2 }
 0x22b   :  { %v331_v48 = vpop.f32.mrf.mxu3 }
 0x22c   :  { %v336_v49 = vadd.f32 %v335_v47, %v331_v48 }
 0x22e   :  { %338 = vst.msk [vmem:[#allocation8] sm:$0x3] %vm337_vm1, %v336_v49 }
 0x22f   :  { %349 = dma.vmem_to_hbm [thread:$0]  %s345_s2, 32, %s347_s30, [#allocation4]  }
 0x233   :  { %v333_v50 = vpop.f32.mrf.mxu3 }
 0x234   :  { %594 = dma.done.wait [#allocation4], 32  }
 0x235   :  { %595 = vsyncadd [#allocation4], 4294967264 }
 0x236   :  { %354 = vsyncpa [#allocation3], 1 }
 0x237   :  { %355 = vsyncpa [#allocation6], 1 }
 0x238   :  { %356 = vsyncpa [#allocation4], 1 }

</bundles_post_ra>
